<compile_context>
chip_gen: v6e
topology: v6e:2x2x1
jax: 0.10.0
libtpu: 0.0.40
codegen_flags: <defaults>
</compile_context>

<pallas_src>
import numpy as np
import jax
import jax.numpy as jnp
from jax.experimental import pallas as pl
from jax.experimental.pallas import tpu as pltpu


def _object_kernel(obj_logit_ref, obj_out_ref):
    """Grid = (image,).  Object-class softmax, background zeroed, max / argmax.

    Output packed LANE-DENSE: obj_out block (1, 2, N_obj) =
      row 0: pred_scores, row 1: pred_labels (small ints stored exactly as f32).
    """
    f32 = jnp.float32
    logit = obj_logit_ref[0].astype(f32)                       # (N_obj, C_obj)
    n_obj, c_obj = logit.shape
    m = jnp.max(logit, axis=-1, keepdims=True)
    e = jnp.exp(logit - m)
    prob = e / jnp.sum(e, axis=-1, keepdims=True)              # exact: these are stored scores
    col = jax.lax.broadcasted_iota(jnp.int32, (n_obj, c_obj), 1)
    prob = jnp.where(col == 0, 0.0, prob)                      # obj_class_prob[:, 0] = 0
    scores = jnp.max(prob, axis=-1, keepdims=True)             # == max over [:, 1:]
    # torch argmax over [:, 1:] + 1, recovered with an equality + min-index reduce.
    # (col > 0) guards the background column (its prob is exactly 0.0 and could otherwise
    # win the min-index pick for a fully-underflowed row).
    pred = jnp.min(jnp.where((col > 0) & (prob == scores), col, c_obj),
                   axis=-1, keepdims=True)                     # (N_obj, 1)
    obj_out_ref[0] = jnp.concatenate([scores.T, pred.astype(f32).T], axis=0)   # (2, N_obj)


def _relation_kernel(rel_logit_ref, pair_ref, obj_ref, rel_prob_ref, rel_out_ref):
    """Grid = (image, rel_tile); both axes parallel (no resident blocks, no scratch)."""
    f32 = jnp.float32

    rlogit = rel_logit_ref[0].astype(f32)                      # (T_rel, C_rel)
    t_rel, c_rel = rlogit.shape
    rm = jnp.max(rlogit, axis=-1, keepdims=True)
    re_ = jnp.exp(rlogit - rm)
    rel_prob = re_ / jnp.sum(re_, axis=-1, keepdims=True)      # exact (stored rel_class_prob)
    rel_prob_ref[0] = rel_prob.astype(rel_prob_ref.dtype)

    rcol = jax.lax.broadcasted_iota(jnp.int32, (t_rel, c_rel), 1)
    masked = jnp.where(rcol == 0, 0.0, rel_prob)
    rel_scores = jnp.max(masked, axis=-1, keepdims=True)       # (T_rel, 1) == max over [:, 1:]
    rel_class = jnp.min(jnp.where((rcol > 0) & (masked == rel_scores), rcol, c_rel),
                        axis=-1, keepdims=True)                # (T_rel, 1) == argmax[:,1:] + 1
    rel_scores_row = rel_scores.T                              # (1, T_rel) lane-dense row form
    rel_class_row = rel_class.astype(f32).T                    # (1, T_rel)

    # gather obj_scores[pair[0]] / obj_scores[pair[1]] with a masked sublane reduce in ROW
    # orientation so s0 / s1 / triple come out directly in the lane-dense output layout.
    pair = pair_ref[0]                                         # (2, T_rel) int32
    scores_row = obj_ref[0][0:1, :]                            # (1, N_obj) pred_scores row
    s_col = scores_row.T                                       # (N_obj, 1): one tiny transpose/tile
    n_obj = s_col.shape[0]
    obj_ids = jax.lax.broadcasted_iota(jnp.int32, (n_obj, t_rel), 0)
    s_b = pl.broadcast_to(s_col, (n_obj, t_rel))               # hoisted; reused by both gathers
    # TODO(synk): for large N_obj (>=128) and a VPU/XLU-saturated bundle, swap this masked
    #             reduce for two one-hot f32 matmuls on the otherwise-idle MXU.
    s0 = jnp.sum(jnp.where(obj_ids == pair[0:1, :], s_b, 0.0), axis=0, keepdims=True)  # (1,T_rel)
    s1 = jnp.sum(jnp.where(obj_ids == pair[1:2, :], s_b, 0.0), axis=0, keepdims=True)  # (1,T_rel)
    pair_score = s0 * s1
    triple = rel_scores_row * pair_score

    # packed LANE-DENSE (4, T_rel) output: [triple, rel_class, rel_score, s0*s1]
    rel_out_ref[0] = jnp.concatenate(
        [triple, rel_class_row, rel_scores_row, pair_score], axis=0)


def relation_postprocess(obj_logits, rel_logits, rel_pair_idxs, boxes, *,
                         rel_tile=None, rel_prob_dtype=jnp.float32, top_k=None):
    """Batched PostProcessor forward (use_gt_box=True, attribute_on=False).

    obj_logits    : (B, N_obj, C_obj) float
    rel_logits    : (B, N_rel, C_rel) float
    rel_pair_idxs : (B, N_rel, 2)     int
    boxes         : (B, N_obj, 4)     xyxy; passed through (use_gt_box=True -> boxlist = box)
    rel_prob_dtype: dtype of the exported rel_class_prob (bf16 halves the dominant HBM term)
    top_k         : if set, only the top-K relations are gathered/sorted (lax.top_k)
    """
    B, n_obj, c_obj = obj_logits.shape
    _, n_rel, c_rel = rel_logits.shape
    rel_pair_idxs = rel_pair_idxs.astype(jnp.int32)

    # Relation tile: biggest-tile-that-fits default.  When tiling, the lane-dense packed
    # outputs / pair input put rel_tile on the LANE axis, so it must be a multiple of 128.
    if rel_tile is None:
        if n_rel <= 2048:
            rel_tile = n_rel
        else:
            rel_tile = next((c for c in range(2048, 0, -128) if n_rel % c == 0), n_rel)
    # TODO(synk): ragged per-image N_rel needs a pad+mask path; tiles must divide evenly here.
    assert n_rel % rel_tile == 0, "rel_tile must divide N_rel"
    assert rel_tile == n_rel or rel_tile % 128 == 0, \
        "tiled rel_tile must be a multiple of 128 (lane-dense packed outputs)"
    n_tiles = n_rel // rel_tile

    # ---------------- kernel 1: object branch, grid (B,) ----------------
    obj_packed = pl.pallas_call(
        _object_kernel,
        out_shape=jax.ShapeDtypeStruct((B, 2, n_obj), jnp.float32),
        grid=(B,),
        in_specs=[pl.BlockSpec((1, n_obj, c_obj), lambda b: (b, 0, 0))],
        out_specs=pl.BlockSpec((1, 2, n_obj), lambda b: (b, 0, 0)),
        compiler_params=pltpu.CompilerParams(dimension_semantics=("parallel",)),
    )(obj_logits)

    # ---------------- kernel 2: relation branch, grid (B, n_tiles), fully parallel --------
    pair_t = jnp.transpose(rel_pair_idxs, (0, 2, 1))           # (B, 2, N_rel): contiguous DMA
    rel_prob, rel_packed = pl.pallas_call(
        _relation_kernel,
        out_shape=(
            jax.ShapeDtypeStruct((B, n_rel, c_rel), rel_prob_dtype),   # rel_class_prob
            jax.ShapeDtypeStruct((B, 4, n_rel), jnp.float32),          # [triple, cls, rel_s, s0*s1]
        ),
        grid=(B, n_tiles),
        in_specs=[
            pl.BlockSpec((1, rel_tile, c_rel), lambda b, t: (b, t, 0)),
            pl.BlockSpec((1, 2, rel_tile), lambda b, t: (b, 0, t)),
            pl.BlockSpec((1, 2, n_obj), lambda b, t: (b, 0, 0)),
        ],
        out_specs=(
            pl.BlockSpec((1, rel_tile, c_rel), lambda b, t: (b, t, 0)),
            pl.BlockSpec((1, 4, rel_tile), lambda b, t: (b, 0, t)),
        ),
        compiler_params=pltpu.CompilerParams(
            # no resident output blocks -> both axes parallel (v7x megacore even at B=1)
            dimension_semantics=("parallel", "parallel"),
            # well below v7x's 64 MiB physical VMEM; working set at rel_tile=2048 is a few MiB
            vmem_limit_bytes=32 * 1024 * 1024,
        ),
    )(rel_logits, pair_t, obj_packed)

    # ---- unpack lane-dense slabs (class indices stored as exact small-int f32) ----
    obj_scores = obj_packed[:, 0, :]                        # (B, N_obj)
    obj_pred = obj_packed[:, 1, :].astype(jnp.int32)        # (B, N_obj)
    triple = rel_packed[:, 0, :]                            # (B, N_rel)
    rel_class = rel_packed[:, 1, :].astype(jnp.int32)       # (B, N_rel)

    # TODO(synk): torch.sort(descending=True) has no clean Pallas equivalent; plain JAX glue.
    if top_k is not None:
        _, order = jax.lax.top_k(triple, min(int(top_k), n_rel))      # (B, K) descending
    else:
        order = jnp.argsort(-triple, axis=-1)                         # (B, N_rel)
    rel_pair_sorted = jnp.take_along_axis(rel_pair_idxs, order[..., None], axis=1)
    rel_prob_sorted = jnp.take_along_axis(rel_prob, order[..., None], axis=1)
    rel_labels_sorted = jnp.take_along_axis(rel_class, order, axis=1)
    triple_sorted = jnp.take_along_axis(triple, order, axis=1)

    # NOTE: the torch module also computes boxlist_iou / ious_pairs / ious_flag but never
    # consumes them (dead code); they are dropped here.
    results = []
    for b in range(B):
        results.append({
            'bbox': boxes[b],                              # use_gt_box=True: boxlist = box
            'pred_labels': obj_pred[b],
            'pred_scores': obj_scores[b],
            'rel_pair_idxs': rel_pair_sorted[b],
            'pred_rel_scores': rel_prob_sorted[b],
            'pred_rel_labels': rel_labels_sorted[b],
            'triple_scores_sorted': triple_sorted[b],      # diagnostic
            '_sorting_idx': order[b],                      # diagnostic (for testing)
        })
    return results


if __name__ == "__main__":
    key = jax.random.PRNGKey(0)
    k1, k2, k3, k4, k5 = jax.random.split(key, 5)

    # small shapes: batch of 2 images, 8 objects, 32 object classes, 256 relations, 16 rel classes
    B = 2
    N_OBJ, C_OBJ = 8, 32
    N_REL, C_REL = 256, 16

    obj_logits = jax.random.normal(k1, (B, N_OBJ, C_OBJ), jnp.float32)
    rel_logits = jax.random.normal(k2, (B, N_REL, C_REL), jnp.float32)
    rel_pair = jax.random.randint(k3, (B, N_REL, 2), 0, N_OBJ, jnp.int32)
    xy = jax.random.uniform(k4, (B, N_OBJ, 2), jnp.float32, 0.0, 50.0)
    wh = jax.random.uniform(k5, (B, N_OBJ, 2), jnp.float32, 5.0, 40.0)
    boxes = jnp.concatenate([xy, xy + wh], axis=-1)        # xyxy

    # rel_tile=128 -> 2 relation tiles per image, exercising the tiled lane-dense path
    results = relation_postprocess(obj_logits, rel_logits, rel_pair, boxes, rel_tile=128)
    results = jax.block_until_ready(results)

    # ---- plain-JAX reference check (exact softmax in-kernel -> tight tolerance) ----
    tol = dict(rtol=1e-4, atol=1e-7)
    for b in range(B):
        res = results[b]
        obj_prob_ref = jax.nn.softmax(obj_logits[b], -1)
        obj_prob_ref = obj_prob_ref.at[:, 0].set(0.0)
        obj_scores_ref = jnp.max(obj_prob_ref[:, 1:], axis=1)
        obj_pred_ref = jnp.argmax(obj_prob_ref[:, 1:], axis=1) + 1

        rel_prob_ref = jax.nn.softmax(rel_logits[b], -1)
        rel_scores_ref = jnp.max(rel_prob_ref[:, 1:], axis=1)
        rel_class_ref = jnp.argmax(rel_prob_ref[:, 1:], axis=1) + 1
        s0 = obj_scores_ref[rel_pair[b, :, 0]]
        s1 = obj_scores_ref[rel_pair[b, :, 1]]
        triple_ref = rel_scores_ref * s0 * s1

        # use the kernel's own permutation so tie-ordering cannot cause spurious mismatches
        order_b = np.asarray(res['_sorting_idx'])

        np.testing.assert_allclose(np.asarray(res['pred_scores']),
                                   np.asarray(obj_scores_ref), **tol)
        np.testing.assert_array_equal(np.asarray(res['pred_labels']),
                                      np.asarray(obj_pred_ref))
        np.testing.assert_array_equal(np.asarray(res['rel_pair_idxs']),
                                      np.asarray(rel_pair[b])[order_b])
        np.testing.assert_array_equal(np.asarray(res['pred_rel_labels']),
                                      np.asarray(rel_class_ref)[order_b])
        np.testing.assert_allclose(np.asarray(res['pred_rel_scores']),
                                   np.asarray(rel_prob_ref)[order_b], **tol)
        np.testing.assert_allclose(np.asarray(res['triple_scores_sorted']),
                                   np.asarray(triple_ref)[order_b], **tol)
        ts = np.asarray(res['triple_scores_sorted'])
        assert np.all(np.diff(ts) <= 1e-9), "triple scores not sorted descending"

    print("KERNEL_OK")
</pallas_src>

<mosaic_0001>
module attributes {stable_mosaic.version = 11 : i64} {
  func.func @_object_kernel(%arg0: i32, %arg1: memref<1x8x32xf32, #tpu.memory_space<vmem>>, %arg2: memref<1x2x8xf32, #tpu.memory_space<vmem>>) attributes {dimension_semantics = [#tpu.dimension_semantics<parallel>], iteration_bounds = array<i64: 2>, scalar_prefetch = 0 : i64, scratch_operands = 0 : i64, tpu.core_type = #tpu.core_type<tc>, window_params = [{transform_indices = @transform_0, window_bounds = array<i64: 1, 8, 32>}, {transform_indices = @transform_1, window_bounds = array<i64: 1, 2, 8>}]} {
    %c0 = arith.constant 0 : index
    %c0_0 = arith.constant 0 : index
    %c0_1 = arith.constant 0 : index
    %0 = vector.load %arg1[%c0, %c0_0, %c0_1] : memref<1x8x32xf32, #tpu.memory_space<vmem>>, vector<1x8x32xf32>
    %1 = vector.shape_cast %0 : vector<1x8x32xf32> to vector<8x32xf32>
    %cst = arith.constant dense<0xFF800000> : vector<8xf32>
    %2 = vector.multi_reduction <maximumf>, %1, %cst [1] : vector<8x32xf32> to vector<8xf32>
    %3 = vector.shape_cast %2 : vector<8xf32> to vector<8x1xf32>
    %4 = vector.broadcast %3 : vector<8x1xf32> to vector<8x32xf32>
    %5 = arith.subf %1, %4 : vector<8x32xf32>
    %6 = math.exp %5 : vector<8x32xf32>
    %cst_2 = arith.constant dense<0.000000e+00> : vector<8xf32>
    %7 = vector.multi_reduction <add>, %6, %cst_2 [1] : vector<8x32xf32> to vector<8xf32>
    %8 = vector.shape_cast %7 : vector<8xf32> to vector<8x1xf32>
    %9 = vector.broadcast %8 : vector<8x1xf32> to vector<8x32xf32>
    %10 = arith.divf %6, %9 : vector<8x32xf32>
    %11 = tpu.iota {dimensions = array<i32: 1>} : vector<8x32xi32>
    %c0_i32 = arith.constant 0 : i32
    %12 = vector.broadcast %c0_i32 : i32 to vector<8x32xi32>
    %13 = arith.cmpi eq, %11, %12 : vector<8x32xi32>
    %cst_3 = arith.constant 0.000000e+00 : f32
    %14 = vector.broadcast %cst_3 : f32 to vector<8x32xf32>
    %15 = arith.select %13, %14, %10 : vector<8x32xi1>, vector<8x32xf32>
    %cst_4 = arith.constant dense<0xFF800000> : vector<8xf32>
    %16 = vector.multi_reduction <maximumf>, %15, %cst_4 [1] : vector<8x32xf32> to vector<8xf32>
    %17 = vector.shape_cast %16 : vector<8xf32> to vector<8x1xf32>
    %c0_i32_5 = arith.constant 0 : i32
    %18 = vector.broadcast %c0_i32_5 : i32 to vector<8x32xi32>
    %19 = arith.cmpi sgt, %11, %18 : vector<8x32xi32>
    %20 = vector.broadcast %17 : vector<8x1xf32> to vector<8x32xf32>
    %21 = arith.cmpf oeq, %15, %20 : vector<8x32xf32>
    %22 = arith.andi %19, %21 : vector<8x32xi1>
    %c32_i32 = arith.constant 32 : i32
    %23 = vector.broadcast %c32_i32 : i32 to vector<8x32xi32>
    %24 = arith.select %22, %11, %23 : vector<8x32xi1>, vector<8x32xi32>
    %cst_6 = arith.constant dense<2147483647> : vector<8xi32>
    %25 = vector.multi_reduction <minsi>, %24, %cst_6 [1] : vector<8x32xi32> to vector<8xi32>
    %26 = vector.shape_cast %25 : vector<8xi32> to vector<8x1xi32>
    %27 = tpu.transpose %17, [1, 0] : vector<8x1xf32> -> vector<1x8xf32>
    %28 = arith.sitofp %26 : vector<8x1xi32> to vector<8x1xf32>
    %29 = tpu.transpose %28, [1, 0] : vector<8x1xf32> -> vector<1x8xf32>
    %30 = tpu.concatenate %27, %29 in 0 : vector<1x8xf32>, vector<1x8xf32> -> vector<2x8xf32>
    %c0_7 = arith.constant 0 : index
    %c0_8 = arith.constant 0 : index
    %c0_9 = arith.constant 0 : index
    %31 = vector.load %arg2[%c0_7, %c0_8, %c0_9] : memref<1x2x8xf32, #tpu.memory_space<vmem>>, vector<1x2x8xf32>
    %32 = vector.shape_cast %31 : vector<1x2x8xf32> to vector<2x8xf32>
    %33 = vector.shape_cast %30 : vector<2x8xf32> to vector<1x2x8xf32>
    tpu.vector_store %arg2[%c0_7, %c0_8, %c0_9], %33 {strides = array<i32>} : memref<1x2x8xf32, #tpu.memory_space<vmem>>, vector<1x2x8xf32>,
    return
  }
  func.func @transform_0(%arg0: i32) -> (i32, i32, i32) {
    %c0_i32 = arith.constant 0 : i32
    %c0_i32_0 = arith.constant 0 : i32
    %c0_i32_1 = arith.constant 0 : i32
    return %arg0, %c0_i32, %c0_i32_0 : i32, i32, i32
  }
  func.func @transform_1(%arg0: i32) -> (i32, i32, i32) {
    %c0_i32 = arith.constant 0 : i32
    %c0_i32_0 = arith.constant 0 : i32
    %c0_i32_1 = arith.constant 0 : i32
    return %arg0, %c0_i32, %c0_i32_0 : i32, i32, i32
  }
}

</mosaic_0001>

<bundles_post_ra>
// kernel: tpu_custom_call.1
= control target key start
LH: loop header
LB: loop body
LE: loop exit
PB: predicated region body
PF: predicated region fallthrough
CT: control target
= control target key end

     0   :  { %6 = vsyncpa [#allocation3], 0  ;;  %s648_s0 = inlined_call_operand.hbm [shape: f32[2,8,32], index: 0, kind: input, shape index: {}]   ;;  %s649_s1 = inlined_call_operand.hbm [shape: f32[2,2,8], index: 1, kind: output, shape index: {}]  }
   0x1   :  { %8 = vsyncpa [#allocation3 + $0x1], 0 }
   0x2   :  { %9 = vsyncpa [#allocation4], 0 }
   0x3   :  { %11 = vsyncpa [#allocation4 + $0x1], 0  ;;  %s496_s6 = smov 0   ;;  %s498_s7 = smov 0  }
   0x4   :  { %s500_s8 = smov 0   ;;  %s502_s9 = smov 0  }
   0x5 LB: > { %s517_s10 = sadd.s32 4294967295, %s482_s9   ;;  %s327_s11 = sadd.s32 4294967294, %s482_s9   ;;  %s482_s9 = sphi %s502_s9, %s666_s9   ;;  %s478_s8 = sphi %s500_s8, %s665_s8   ;;  %s474_s7 = sphi %s498_s7, %s664_s7   ;;  %s470_s6 = sphi %s496_s6, %s663_s6  }
   0x6   : > { %s521_s12 = sadd.s32 1, %s482_s9   ;;  %s24_s13 = sadd.s32 1, %s478_s8 }
   0x7   : > { %s21_s14 = ssub.s32 %s482_s9, %s521_s12  ;;  %p31_p0 = scmp.ne.s32.totalorder %s478_s8, %s474_s7 }
   0x8   : > { %p22_p1 = scmp.eq.s32.totalorder %s21_s14, 0  ;;  %p32_p2 = scmp.eq.s32.totalorder %s482_s9, 0 }
   0x9   : > { %p37_p3 = scmp.ne.s32.totalorder %s474_s7, %s470_s6  ;;  %p38_p4 = scmp.eq.s32.totalorder %s517_s10, 0 }
   0xa   : > { %s533_s15 = scalar_select %p22_p1, %s478_s8, %s24_s13  }
   0xb   : > { %p535_p5 = por %p32_p2, %p31_p0  ;;  %p539_p6 = por %p38_p4, %p37_p3 }
   0xc   : > { %p61_p7 = scmp.eq.s32.totalorder %s517_s10, 1  ;;  %p67_p8 = scmp.eq.s32.totalorder %s327_s11, 1 }
   0xd   : > { %s653_s17 = scalar_select %p539_p6, 1, 0 }
   0xe   : > { %p351_p10 = scmp.lt.s32.totalorder %s482_s9, 2  ;;  %p546_p11 = por %p61_p7, %p31_p0 }
   0xf   : > { %p550_p12 = por %p67_p8, %p37_p3  ;;  %s87_s20 = sand.u32 1, %s478_s8  }
  0x10   : > { %s654_s18 = scalar_select %p546_p11, 1, 0 }
  0x11   : > { %s655_s19 = scalar_select %p550_p12, 1, 0 }
  0x12   : > { %s331_s21 = sshll.u32 %s482_s9, 7  ;;  %s330_s22 = sshll.u32 %s87_s20, 3 }
  0x13   : > { %s559_s25 = scalar_lea.hbm %s648_s0, %s331_s21  ;;  %s91_s26 = scalar_lea.vmem [#allocation2], %s330_s22 }
  0x14   : > { %s98_s27 = sshll.u32 %s91_s26, 4  ;;  %p563_p13 = pnand %p351_p10, %p535_p5  ;;  %s567_s27 = int_to_ptr.vmem [resolvable:$true] %s98_s27 }
  0x15   : > { %s88_s29 = scalar_lea.sflag [#allocation3], %s87_s20  ;;  %s390_s30 = scalar_lea.hbm %s559_s25, 128 }
  0x16   : > { %p391_p2 = scmp.ne.s32.totalorder %s559_s25, %s390_s30  ;;  %p392_p3 = pneg %p563_p13 }
  0x17   : > { %s395_s4 = scalar_lea.hbm %s648_s0, 256  ;;  %p396_p5 = scmp.lt.s32.totalorder %s559_s25, %s648_s0 }
  0x18   : > { %p393_p4 = pnand %p392_p3, %p391_p2  ;;  %p397_p8 = scmp.lt.s32.totalorder %s395_s4, %s390_s30 }
  0x1a   : > { %p394_p7 = pneg %p393_p4  ;;  %p398_p10 = por %p397_p8, %p396_p5 }
  0x1c   : > { %p399_p9 = pnand %p398_p10, %p394_p7 }
  0x1e   : > { %402 = shalt.err (!%p399_p9)
}
  0x1f   : > { %s403_s13 = scalar_lea.vmem %s567_s27, 128  ;;  %s484_s14 = smov [#allocation2]  }
  0x20   : > { %p404_p0 = scmp.ne.s32.totalorder %s567_s27, %s403_s13  ;;  %s408_s16 = sshll.u32 %s484_s14, 4  ;;  %s409_s16 = int_to_ptr.vmem [resolvable:$false] %s408_s16 }
  0x21   : > { %s410_s20 = scalar_lea.vmem %s409_s16, 256  ;;  %p411_p4 = scmp.lt.s32.totalorder %s567_s27, %s409_s16 }
  0x22   : > { %p406_p1 = pnand %p404_p0, %p392_p3  ;;  %p412_p12 = scmp.lt.s32.totalorder %s410_s20, %s403_s13 }
  0x24   : > { %p407_p2 = pneg %p406_p1  ;;  %p413_p11 = por %p412_p12, %p411_p4 }
  0x26   : > { %p414_p6 = pnand %p413_p11, %p407_p2 }
  0x28   : > { %417 = shalt.err (!%p414_p6)
}
  0x29   : > { %346 = dma.hbm_to_vmem [thread:$0]  (!%p563_p13), %s559_s25, 128, %s567_s27, %s88_s29  }
  0x2a   : > { %p657_p9 = scmp.lt.s32.totalorder %s482_s9, 3  ;;  %p658_p7 = scmp.ge.s32.totalorder %s482_s9, 1 }
  0x2c   : > { %p104_p0 = pnand %p658_p7, %p657_p9 }
  0x2d   : > { %s594_s21 = sand.u32 (!%p104_p0), 1, %s474_s7   ;;  %p659_p6 = scmp.ne.s32.totalorder (!%p104_p0), %s653_s17, 0 }
  0x2e   : > { %107 = sbr.rel (%p104_p0) target bundleno = 938 (0x3aa), region = 24  ;;  %s333_s22 = sshll.u32 (!%p104_p0), %s594_s21, 3 }
  0x2f   : > { %s110_s23 = scalar_lea.sflag (!%p104_p0), [#allocation3], %s594_s21  ;;  %s113_s24 = scalar_lea.vmem (!%p104_p0), [#allocation2], %s333_s22 }
  0x33   : > { %461 = dma.done.wait (%p659_p6), %s110_s23, 128  }
  0x34   : > { %463 = vsyncadd (%p659_p6), %s110_s23, 4294967168  ;;  %vm133_vm0 = vcmask 261120   ;;  %v132_v0 = vld [vmem:[%s113_s24] sm:$0xff]  ;;  %v145_v8 = vlaneseq  ;;  %s334_s17 = sshll.u32 %s594_s21, 1  ;;  %s336_s25 = sshll.u32 %s517_s10, 5  ;;  %vm239_vm6 = vcmask 1040384  }
  0x35   : > { %v134_v1 = vsel %vm133_vm0, %v132_v0, -inf  ;;  %s131_s26 = scalar_lea.vmem [#allocation5], %s334_s17  ;;  %vm241_vm7 = vcmask 58368   ;;  %s611_s30 = scalar_lea.hbm %s649_s1, %s336_s25 }
  0x36   : > { %135 = vmax.xlane.f32.xlu0 %v134_v1  ;;  %v146_v9 = vand.u32 127, %v145_v8  ;;  %s257_s27 = sshll.u32 %s131_s26, 4  ;;  %s244_s2 = scalar_lea.sflag [#allocation4], %s594_s21  ;;  %s258_s27 = int_to_ptr.vmem [resolvable:$true] %s257_s27 }
  0x37   : > { %s418_s3 = scalar_lea.vmem %s258_s27, 32  ;;  %p660_p12 = scmp.ne.s32.totalorder %s654_s18, 0 }
  0x38   : > { %vm147_vm1 = vcmp.eq.s32.totalorder %v146_v9, 0  ;;  %vm152_vm2 = vcmp.gt.s32.totalorder %v146_v9, 0  ;;  %p419_p11 = scmp.ne.s32.totalorder %s258_s27, %s418_s3  ;;  %s485_s10 = smov [#allocation5]  }
  0x39   : > { %s422_s4 = sshll.u32 %s485_s10, 4  ;;  %s423_s4 = int_to_ptr.vmem [resolvable:$false] %s422_s4 }
  0x3a   : > { %p420_p13 = pnand %p419_p11, %p660_p12  ;;  %s424_s5 = scalar_lea.vmem %s423_s4, 64 }
  0x3b   : > { %p425_p3 = scmp.lt.s32.totalorder %s258_s27, %s423_s4  ;;  %p426_p5 = scmp.lt.s32.totalorder %s424_s5, %s418_s3 }
  0x3c   : > { %p421_p1 = pneg %p420_p13 }
  0x3d   : > { %p427_p8 = por %p426_p5, %p425_p3 }
  0x3f   : > { %p428_p10 = pnand %p427_p8, %p421_p1 }
  0xbf   : > { %v136_v2 = vpop.xlane.xlu0 %135 }
  0xc0   : > { %v137_v3 = vsub.f32 %v132_v0, %v136_v2 }
  0xc2   : > { %v138_v4 = vmul.f32 1.442695, %v137_v3 }
  0xc4   : > { %386 = vpow2.f32 %v138_v4 }
  0xd1   : > { %v387_v5 = vpop.eup %386 }
  0xd2   : > { %v140_v6 = vsel %vm133_vm0, %v387_v5, 0.0 }
  0xd3   : > { %141 = vadd.xlane.f32.xlu0 %v140_v6 }
 0x15c   : > { %v142_v7 = vpop.xlane.xlu0 %141 }
 0x15d   : > { %388 = vrcp.f32 %v142_v7 }
 0x16a   : > { %v389_v10 = vpop.eup %388 }
 0x16b   : > { %v144_v11 = vmul.f32 %v389_v10, %v387_v5 }
 0x16d   : > { %v148_v12 = vsel %vm147_vm1, 0.0, %v144_v11 }
 0x16e   : > { %v149_v13 = vsel %vm133_vm0, %v148_v12, -inf }
 0x16f   : > { %150 = vmax.xlane.f32.xlu1 %v149_v13 }
 0x1f8   : > { %v151_v14 = vpop.xlane.xlu1 %150 }
 0x1f9   : > { %vm153_vm3 = vcmp.eq.f32.partialorder %v148_v12, %v151_v14 }
 0x1fa   : > { %vm154_vm4 = vmand %vm152_vm2, %vm153_vm3 }
 0x1fb   : > { %v155_v15 = vsel %vm154_vm4, %v146_v9, 32 }
 0x1fc   : > { %v156_v16 = vsel %vm133_vm0, %v155_v15, 2147483647 }
 0x1fd   : > { %v158_v17 = vshra.s32 %v156_v16, 16  ;;  %v157_v19 = vand.u32 65535, %v156_v16 }
 0x1ff   : > { %v160_v18 = vcvt.s32.f32 %v158_v17  ;;  %v159_v21 = vcvt.s32.f32 %v157_v19 }
 0x201   : > { %161 = vmin.xlane.f32.xlu1 %v160_v18 }
 0x28a   : > { %v162_v20 = vpop.xlane.xlu1 %161 }
 0x28b   : > { %vm163_vm5 = vcmp.eq.f32.partialorder %v160_v18, %v162_v20  ;;  %v168_v23 = vcvt.f32.s32 %v162_v20 }
 0x28c   : > { %v164_v22 = vsel %vm163_vm5, %v159_v21, inf }
 0x28d   : > { %165 = vmin.xlane.f32.xlu0 %v164_v22  ;;  %v169_v25 = vshll.u32 %v168_v23, 16 }
 0x2ba   : > { %171 = vxpose.xlu0.b32.start.end [1/1] (short) (narrow) %v151_v14, 8 }
 0x316   : > { %v166_v24 = vpop.xlane.xlu0 %165 }
 0x317   : > { %v167_v26 = vcvt.f32.s32 %v166_v24 }
 0x319   : > { %v170_v27 = vadd.s32 %v169_v25, %v167_v26 }
 0x31b   : > { %v203_v28 = vcvt.s32.f32 %v170_v27 }
 0x31d   : > { %204 = vxpose.xlu1.b32.start.end [1/1] (short) (narrow) %v203_v28, 8 }
 0x336   : > { %v187_v30 = vpop.trf.xlu0 }
 0x399   : > { %v220_v29 = vpop.trf.xlu1 }
 0x39a   : > { %v237_v31 = vrot.slane %v220_v29, 7 }
 0x39c   : > { %v240_v32 = vsel %vm239_vm6, %v187_v30, %v237_v31 }
 0x39d   : > { %242 = vst.msk [vmem:[%s131_s26] sm:$0x3] %vm241_vm7, %v240_v32 }
 0x39e   : > { %431 = shalt.err (!%p428_p10)
}
 0x39f   : > { %s432_s11 = scalar_lea.hbm %s611_s30, 32  ;;  %s436_s16 = scalar_lea.hbm %s649_s1, 64 }
 0x3a0   : > { %p433_p2 = scmp.ne.s32.totalorder %s611_s30, %s432_s11  ;;  %p437_p7 = scmp.lt.s32.totalorder %s611_s30, %s649_s1 }
 0x3a1   : > { %p438_p0 = scmp.lt.s32.totalorder %s436_s16, %s432_s11 }
 0x3a2   : > { %p434_p4 = pnand %p433_p2, %p660_p12 }
 0x3a3   : > { %p439_p6 = por %p438_p0, %p437_p7 }
 0x3a4   : > { %p435_p9 = pneg %p434_p4 }
 0x3a6   : > { %p440_p11 = pnand %p439_p6, %p435_p9 }
 0x3a8   : > { %443 = shalt.err (!%p440_p11)
}
 0x3a9   : > { %341 = dma.vmem_to_hbm [thread:$0]  (%p660_p12), %s258_s27, 32, %s611_s30, %s244_s2  }
 0x3aa PF: > { %s269_s22 = sand.u32 1, %s470_s6   ;;  %p661_p13 = scmp.ne.s32.totalorder %s655_s19, 0 }
 0x3ab   : > { %p662_p1 = scmp.ge.s32.totalorder %s482_s9, 2  ;;  %s270_s23 = scalar_lea.sflag [#allocation4], %s269_s22 }
 0x3ad   : > { %p348_p3 = pnand %p662_p1, %p661_p13 }
 0x3af   : > { %p349_p5 = pneg %p348_p3 }
 0x3b1   : > { %465 = dma.done.wait (%p349_p5), %s270_s23, 32  }
 0x3b2   : > { %467 = vsyncadd (%p349_p5), %s270_s23, 4294967264  ;;  %p14_p8 = scmp.ge.s32.totalorder %s521_s12, 4   ;;  %s663_s6 = smov %s474_s7 }
 0x3b3   : > { %s664_s7 = smov %s478_s8  ;;  %s665_s8 = smov %s533_s15 }
 0x3b4   : > { %s666_s9 = smov %s521_s12  ;;  %16 = sbr.rel (!%p14_p8) target bundleno = 5 (0x5), region = 69 }
 0x3b9   :  { %275 = vsyncpa [#allocation3], 1 }
 0x3ba   :  { %277 = vsyncpa [#allocation3 + $0x1], 1 }
 0x3bb   :  { %278 = vsyncpa [#allocation4], 1 }
 0x3bc   :  { %280 = vsyncpa [#allocation4 + $0x1], 1 }

</bundles_post_ra>
